<compile_context>
chip_gen: v7x
topology: tpu7x:2x2x1
jax: 0.10.0
libtpu: 0.0.40
codegen_flags: <defaults>
</compile_context>

<pallas_src>
import functools

import jax
import jax.numpy as jnp
from jax.experimental import pallas as pl
from jax.experimental.pallas import tpu as pltpu

LANE = 128


def _round_up(v, m):
    return (v + m - 1) // m * m


# ----------------------------------------------------------------------------- Pallas kernels
def _matmul_bias_kernel(x_ref, w_ref, b_ref, o_ref, acc_ref, *, relu):
    """Tiled matmul over an (M, N, K) grid.  f32 accumulator lives in VMEM scratch;
    bias add + optional ReLU happen only in the K-finalize branch."""
    @pl.when(pl.program_id(2) == 0)
    def _():
        acc_ref[...] = jnp.zeros_like(acc_ref)

    acc_ref[...] += jnp.dot(x_ref[...], w_ref[...],
                            preferred_element_type=jnp.float32)

    @pl.when(pl.program_id(2) == pl.num_programs(2) - 1)
    def _():
        out = acc_ref[...] + b_ref[...]          # (1, tn) broadcasts over tm rows
        if relu:
            out = jnp.maximum(out, 0.0)
        o_ref[...] = out.astype(o_ref.dtype)


def _ema_kernel(t_ref, s_ref, o_ref, *, decay):
    o_ref[...] = t_ref[...] * decay + s_ref[...] * (1.0 - decay)


# ----------------------------------------------------------------------------- matmul wrapper
def _k_tile(K, pref=512):
    """Largest multiple of 128 that is <= pref and divides K (K is a multiple of 128)."""
    for cand in range(pref, LANE - 1, -LANE):
        if K % cand == 0:
            return cand
    return LANE


def matmul_bias_pallas(x, w, b, *, relu=False, out_dtype=jnp.bfloat16):
    """(M,K) @ (K,N) + b, optional ReLU.  K and N are multiples of 128 by construction
    (lane-padded channel layout), so only M may need padding."""
    M, K = x.shape
    K2, N = w.shape
    assert K == K2 and K % LANE == 0 and N % LANE == 0, (x.shape, w.shape)

    tm = min(_round_up(M, 8), 256)
    Mp = _round_up(M, tm)
    tn = 256 if N % 256 == 0 else LANE
    tk = _k_tile(K)

    xb = x.astype(jnp.bfloat16)
    if Mp != M:
        xb = jnp.pad(xb, ((0, Mp - M), (0, 0)))
    wb = w.astype(jnp.bfloat16)
    bf = b.astype(jnp.float32).reshape(1, N)

    out_bytes = jnp.dtype(out_dtype).itemsize
    cost = pl.CostEstimate(
        flops=2 * Mp * N * K,
        transcendentals=0,
        bytes_accessed=Mp * K * 2 + K * N * 2 + Mp * N * out_bytes + N * 4)

    out = pl.pallas_call(
        functools.partial(_matmul_bias_kernel, relu=relu),
        out_shape=jax.ShapeDtypeStruct((Mp, N), out_dtype),
        grid_spec=pltpu.PrefetchScalarGridSpec(
            num_scalar_prefetch=0,
            grid=(Mp // tm, N // tn, K // tk),
            in_specs=[
                pl.BlockSpec((tm, tk), lambda i, j, k: (i, k)),
                pl.BlockSpec((tk, tn), lambda i, j, k: (k, j)),
                pl.BlockSpec((1, tn), lambda i, j, k: (0, j)),
            ],
            out_specs=pl.BlockSpec((tm, tn), lambda i, j, k: (i, j)),
            scratch_shapes=[pltpu.VMEM((tm, tn), jnp.float32)]),
        compiler_params=pltpu.CompilerParams(
            dimension_semantics=("parallel", "parallel", "arbitrary"),
            vmem_limit_bytes=48 * 1024 * 1024),
        cost_estimate=cost,
    )(xb, wb, bf)
    return out[:M] if Mp != M else out


# ----------------------------------------------------------------------------- EMA update
def _row_tile(rows, pref=512):
    if rows <= pref:
        return rows
    for cand in range(pref, 7, -8):
        if rows % cand == 0:
            return cand
    return rows


def _ema_leaf(t, s, decay):
    """EMA on one parameter leaf: lane-dense 2-D view, tiled grid, aliased output."""
    size = t.size
    lane = next((c for c in (1024, 512, 256, 128) if size % c == 0), 0)
    if lane == 0:
        # TODO(synk): irregular (non-lane-aligned) leaf size; plain XLA fallback.
        return (t * decay + s * (1.0 - decay)).astype(t.dtype)
    rows = size // lane
    tr = _row_tile(rows)
    out = pl.pallas_call(
        functools.partial(_ema_kernel, decay=decay),
        out_shape=jax.ShapeDtypeStruct((rows, lane), t.dtype),
        grid=(rows // tr,),
        in_specs=[pl.BlockSpec((tr, lane), lambda i: (i, 0)),
                  pl.BlockSpec((tr, lane), lambda i: (i, 0))],
        out_specs=pl.BlockSpec((tr, lane), lambda i: (i, 0)),
        input_output_aliases={0: 0},           # reuse the teacher buffer for the output
        compiler_params=pltpu.CompilerParams(
            dimension_semantics=("parallel",)),
    )(t.reshape(rows, lane), s.reshape(rows, lane))
    return out.reshape(t.shape)


def ema_update_pallas(teacher_params, student_params, decay):
    """teacher <- decay * teacher + (1 - decay) * student, per-leaf (no concat/split copies).
    TODO(synk): in a real training loop keep params as one persistent flat buffer so the
    aliased update is truly in-place with zero extra HBM traffic."""
    assert (jax.tree_util.tree_structure(teacher_params)
            == jax.tree_util.tree_structure(student_params)), "pytree mismatch"
    return jax.tree_util.tree_map(
        lambda t, s: _ema_leaf(t, s, decay), teacher_params, student_params)


# ----------------------------------------------------------------------------- conv glue
def _extract_patches(x, kh, kw, stride, padding):
    """x: NHWC -> (N, Ho, Wo, kh*kw*C) patches.  Pure slicing (no compute)."""
    N, H, W, C = x.shape
    xpad = jnp.pad(x, ((0, 0), (padding, padding), (padding, padding), (0, 0)))
    Ho = (H + 2 * padding - kh) // stride + 1
    Wo = (W + 2 * padding - kw) // stride + 1
    pieces = []
    for i in range(kh):
        for j in range(kw):
            pieces.append(xpad[:, i:i + stride * Ho:stride, j:j + stride * Wo:stride, :])
    return jnp.concatenate(pieces, axis=-1), Ho, Wo


def conv2d(x, w, b, *, stride=1, padding=0, relu=False, out_dtype=jnp.bfloat16):
    """x: NHWC (lane-padded C), w: (kh,kw,Cin_pad,Cout_pad), b: (Cout_pad,)."""
    kh, kw, cin, cout = w.shape
    N, H, W, C = x.shape
    assert C == cin, (C, cin)
    if kh == 1 and kw == 1 and stride == 1 and padding == 0:
        xm = x.reshape(N * H * W, C)              # 1x1 conv: skip im2col entirely
        Ho, Wo = H, W
    else:
        # TODO(synk): stream the kh*kw patch blocks through the K grid axis via BlockSpec
        # index_map instead of materializing the im2col matrix in HBM.
        patches, Ho, Wo = _extract_patches(x, kh, kw, stride, padding)
        xm = patches.reshape(N * Ho * Wo, kh * kw * C)
    out = matmul_bias_pallas(xm, w.reshape(kh * kw * cin, cout), b,
                             relu=relu, out_dtype=out_dtype)
    return out.reshape(N, Ho, Wo, cout)


# ----------------------------------------------------------------------------- params (lane-padded once)
def _pad_axis(a, axis, new_size):
    pad = [(0, 0)] * a.ndim
    pad[axis] = (0, new_size - a.shape[axis])
    return jnp.pad(a, pad)


def pad_conv_params(w, b, cin_segments=None):
    """Pad weight/bias once so both channel axes are lane (128) aligned.  cin_segments
    describes the padded layout of the input-channel axis so it matches concatenations
    of already-padded activations (used by the decoder)."""
    kh, kw, cin, cout = w.shape
    cout_p = _round_up(cout, LANE)
    if cin_segments is None:
        cin_segments = [(cin, _round_up(cin, LANE))]
    parts, off = [], 0
    for orig, padded in cin_segments:
        parts.append(_pad_axis(w[:, :, off:off + orig, :], 2, padded))
        off += orig
    assert off == cin
    w_p = jnp.concatenate(parts, axis=2) if len(parts) > 1 else parts[0]
    w_p = _pad_axis(w_p, 3, cout_p)
    b_p = jnp.pad(b, (0, cout_p - cout))
    return w_p, b_p


def init_params(key, in_channels, num_classes):
    keys = jax.random.split(key, 6)

    def conv_init(k, kh, kw, cin, cout):
        fan_in = kh * kw * cin
        w = jax.random.normal(k, (kh, kw, cin, cout), jnp.float32) * (2.0 / fan_in) ** 0.5
        b = jnp.zeros((cout,), jnp.float32)
        return w, b

    p = {}
    w, b = conv_init(keys[0], 3, 3, in_channels, 16)
    p["enc1_w"], p["enc1_b"] = pad_conv_params(w, b)
    w, b = conv_init(keys[1], 3, 3, 16, 32)
    p["enc2_w"], p["enc2_b"] = pad_conv_params(w, b)
    w, b = conv_init(keys[2], 1, 1, 32, 32)
    p["aspp_w"], p["aspp_b"] = pad_conv_params(w, b)
    w, b = conv_init(keys[3], 1, 1, 16, 8)
    p["lowproj_w"], p["lowproj_b"] = pad_conv_params(w, b)
    w, b = conv_init(keys[4], 3, 3, 40, 32)
    # decoder input is concat(padded aspp[32->128], padded lowproj[8->128])
    p["dec_w"], p["dec_b"] = pad_conv_params(w, b, cin_segments=[(32, 128), (8, 128)])
    w, b = conv_init(keys[5], 1, 1, 32, num_classes)
    p["head_w"], p["head_b"] = pad_conv_params(w, b)
    return p


# ----------------------------------------------------------------------------- DeepLabV3+-lite forward
# TODO(synk): full smp.DeepLabV3Plus (ResNet encoder, full dilated ASPP, 256 decoder
# channels, ImageNet weights) is not reproducible in-script; a compact DeepLabV3+-shaped
# network with deterministic random init stands in.  All conv math runs in Pallas.
def deeplab_forward(params, x, num_classes):
    N, H, W, C = x.shape
    cin_pad = params["enc1_w"].shape[2]
    xp = jnp.pad(x, ((0, 0), (0, 0), (0, 0), (0, cin_pad - C))).astype(jnp.bfloat16)

    low = conv2d(xp, params["enc1_w"], params["enc1_b"], stride=2, padding=1, relu=True)
    high = conv2d(low, params["enc2_w"], params["enc2_b"], stride=2, padding=1, relu=True)
    aspp = conv2d(high, params["aspp_w"], params["aspp_b"], relu=True)
    aspp_up = jax.image.resize(
        aspp, (N, low.shape[1], low.shape[2], aspp.shape[-1]), method="bilinear")
    low_p = conv2d(low, params["lowproj_w"], params["lowproj_b"], relu=True)
    dec_in = jnp.concatenate([aspp_up, low_p], axis=-1)   # padded layout matches dec_w
    dec = conv2d(dec_in, params["dec_w"], params["dec_b"], stride=1, padding=1, relu=True)
    logits = conv2d(dec, params["head_w"], params["head_b"], relu=False,
                    out_dtype=jnp.float32)
    logits = logits[..., :num_classes]                    # drop lane padding at the head only
    logits = jax.image.resize(logits, (N, H, W, num_classes), method="bilinear")
    return logits


# ----------------------------------------------------------------------------- MeanTeacherNetwork
def mean_teacher_forward(student_params, teacher_params, data_nchw, num_classes, *,
                         step=1, cur_iter=None, training=True, ema_decay=0.999):
    """Returns ((s_out, t_out), new_teacher_params).  Outputs are NCHW to match PyTorch."""
    data = jnp.transpose(data_nchw, (0, 2, 3, 1))          # NCHW -> NHWC

    if not training:
        s_out = deeplab_forward(student_params, data, num_classes)
        t_out = deeplab_forward(teacher_params, data, num_classes)
        return ((jnp.transpose(s_out, (0, 3, 1, 2)),
                 jnp.transpose(t_out, (0, 3, 1, 2))), teacher_params)

    if cur_iter == 0:
        # copy student -> teacher (same ordering as the PyTorch reference: copy first,
        # then forward, then EMA-update the freshly copied params)
        teacher_params = jax.tree_util.tree_map(lambda s: s, student_params)

    s_out = deeplab_forward(student_params, data, num_classes)
    t_out = jax.lax.stop_gradient(deeplab_forward(teacher_params, data, num_classes))

    if step == 1:
        teacher_params = ema_update_pallas(teacher_params, student_params, ema_decay)

    return ((jnp.transpose(s_out, (0, 3, 1, 2)),
             jnp.transpose(t_out, (0, 3, 1, 2))), teacher_params)


# ----------------------------------------------------------------------------- main
if __name__ == "__main__":
    key = jax.random.PRNGKey(0)
    k_data, k_student, k_teacher = jax.random.split(key, 3)

    batch, channels, spatial, num_classes = 2, 4, 16, 3
    data = jax.random.normal(k_data, (batch, channels, spatial, spatial), jnp.float32)

    student_params = init_params(k_student, channels, num_classes)
    teacher_params = init_params(k_teacher, channels, num_classes)

    (s_out, t_out), new_teacher = mean_teacher_forward(
        student_params, teacher_params, data, num_classes,
        step=1, cur_iter=1, training=True, ema_decay=0.999)

    jax.block_until_ready(s_out)
    jax.block_until_ready(t_out)
    jax.block_until_ready(new_teacher)

    assert s_out.shape == (batch, num_classes, spatial, spatial), s_out.shape
    assert t_out.shape == (batch, num_classes, spatial, spatial), t_out.shape
    assert jnp.all(jnp.isfinite(s_out)) and jnp.all(jnp.isfinite(t_out))

    # EMA sanity: new teacher = 0.999*teacher + 0.001*student (padded layout, same math)
    ref = 0.999 * teacher_params["enc1_w"] + 0.001 * student_params["enc1_w"]
    assert jnp.allclose(new_teacher["enc1_w"], ref, atol=1e-5)
    ref_b = 0.999 * teacher_params["dec_b"] + 0.001 * student_params["dec_b"]
    assert jnp.allclose(new_teacher["dec_b"], ref_b, atol=1e-5)

    print("KERNEL_OK")
</pallas_src>

<mosaic_0001>
module attributes {stable_mosaic.version = 11 : i64} {
  func.func @_matmul_bias_kernel(%arg0: i32, %arg1: i32, %arg2: i32, %arg3: memref<128x384xbf16, #tpu.memory_space<vmem>>, %arg4: memref<384x128xbf16, #tpu.memory_space<vmem>>, %arg5: memref<1x128xf32, #tpu.memory_space<vmem>>, %arg6: memref<128x128xbf16, #tpu.memory_space<vmem>>, %arg7: memref<128x128xf32, #tpu.memory_space<vmem>>) attributes {dimension_semantics = [#tpu.dimension_semantics<parallel>, #tpu.dimension_semantics<parallel>, #tpu.dimension_semantics<arbitrary>], iteration_bounds = array<i64: 1, 1, 3>, scalar_prefetch = 0 : i64, scratch_operands = 1 : i64, tpu.core_type = #tpu.core_type<tc>, window_params = [{transform_indices = @transform_0, window_bounds = array<i64: 128, 384>}, {transform_indices = @transform_1, window_bounds = array<i64: 384, 128>}, {transform_indices = @transform_2, window_bounds = array<i64: 1, 128>}, {transform_indices = @transform_3, window_bounds = array<i64: 128, 128>}]} {
    %c0_i32 = arith.constant 0 : i32
    %0 = arith.cmpi eq, %arg2, %c0_i32 : i32
    %1 = arith.extui %0 : i1 to i32
    %c0_i32_0 = arith.constant 0 : i32
    %2 = arith.cmpi ne, %1, %c0_i32_0 : i32
    scf.if %2 {
      %cst_9 = arith.constant 0.000000e+00 : f32
      %12 = vector.broadcast %cst_9 : f32 to vector<128x128xf32>
      %c0_10 = arith.constant 0 : index
      %c0_11 = arith.constant 0 : index
      %13 = vector.load %arg7[%c0_10, %c0_11] : memref<128x128xf32, #tpu.memory_space<vmem>>, vector<128x128xf32>
      tpu.vector_store %arg7[%c0_10, %c0_11], %12 {strides = array<i32>} : memref<128x128xf32, #tpu.memory_space<vmem>>, vector<128x128xf32>,
    } else {
    }
    %c0 = arith.constant 0 : index
    %c0_1 = arith.constant 0 : index
    %3 = vector.load %arg7[%c0, %c0_1] : memref<128x128xf32, #tpu.memory_space<vmem>>, vector<128x128xf32>
    %c0_2 = arith.constant 0 : index
    %c0_3 = arith.constant 0 : index
    %4 = vector.load %arg3[%c0_2, %c0_3] : memref<128x384xbf16, #tpu.memory_space<vmem>>, vector<128x384xbf16>
    %c0_4 = arith.constant 0 : index
    %c0_5 = arith.constant 0 : index
    %5 = vector.load %arg4[%c0_4, %c0_5] : memref<384x128xbf16, #tpu.memory_space<vmem>>, vector<384x128xbf16>
    %cst = arith.constant dense<0.000000e+00> : vector<128x128xf32>
    %6 = tpu.matmul %4, %5, %cst {dimension_numbers = #tpu.dot_dimension_numbers<[1], [0], [0], [1], [0, 0, 1, 1], [], []>} : vector<128x384xbf16>, vector<384x128xbf16>, vector<128x128xf32> -> vector<128x128xf32>
    %7 = arith.addf %3, %6 : vector<128x128xf32>
    %c0_6 = arith.constant 0 : index
    %c0_7 = arith.constant 0 : index
    %8 = vector.load %arg7[%c0_6, %c0_7] : memref<128x128xf32, #tpu.memory_space<vmem>>, vector<128x128xf32>
    tpu.vector_store %arg7[%c0_6, %c0_7], %7 {strides = array<i32>} : memref<128x128xf32, #tpu.memory_space<vmem>>, vector<128x128xf32>,
    %c2_i32 = arith.constant 2 : i32
    %9 = arith.cmpi eq, %arg2, %c2_i32 : i32
    %10 = arith.extui %9 : i1 to i32
    %c0_i32_8 = arith.constant 0 : i32
    %11 = arith.cmpi ne, %10, %c0_i32_8 : i32
    scf.if %11 {
      %c0_9 = arith.constant 0 : index
      %c0_10 = arith.constant 0 : index
      %12 = vector.load %arg7[%c0_9, %c0_10] : memref<128x128xf32, #tpu.memory_space<vmem>>, vector<128x128xf32>
      %c0_11 = arith.constant 0 : index
      %c0_12 = arith.constant 0 : index
      %13 = vector.load %arg5[%c0_11, %c0_12] : memref<1x128xf32, #tpu.memory_space<vmem>>, vector<1x128xf32>
      %14 = vector.broadcast %13 : vector<1x128xf32> to vector<128x128xf32>
      %15 = arith.addf %12, %14 : vector<128x128xf32>
      %cst_13 = arith.constant 0.000000e+00 : f32
      %16 = vector.broadcast %cst_13 : f32 to vector<128x128xf32>
      %17 = arith.maximumf %15, %16 : vector<128x128xf32>
      %18 = arith.truncf %17 : vector<128x128xf32> to vector<128x128xbf16>
      %c0_14 = arith.constant 0 : index
      %c0_15 = arith.constant 0 : index
      %19 = vector.load %arg6[%c0_14, %c0_15] : memref<128x128xbf16, #tpu.memory_space<vmem>>, vector<128x128xbf16>
      tpu.vector_store %arg6[%c0_14, %c0_15], %18 {strides = array<i32>} : memref<128x128xbf16, #tpu.memory_space<vmem>>, vector<128x128xbf16>,
    } else {
    }
    return
  }
  func.func @transform_0(%arg0: i32, %arg1: i32, %arg2: i32) -> (i32, i32) {
    %c0_i32 = arith.constant 0 : i32
    return %arg0, %arg2 : i32, i32
  }
  func.func @transform_1(%arg0: i32, %arg1: i32, %arg2: i32) -> (i32, i32) {
    %c0_i32 = arith.constant 0 : i32
    return %arg2, %arg1 : i32, i32
  }
  func.func @transform_2(%arg0: i32, %arg1: i32, %arg2: i32) -> (i32, i32) {
    %c0_i32 = arith.constant 0 : i32
    %c0_i32_0 = arith.constant 0 : i32
    return %c0_i32, %arg1 : i32, i32
  }
  func.func @transform_3(%arg0: i32, %arg1: i32, %arg2: i32) -> (i32, i32) {
    %c0_i32 = arith.constant 0 : i32
    return %arg0, %arg1 : i32, i32
  }
}

</mosaic_0001>

<bundles_post_ra>
// kernel: tpu_custom_call.1
= control target key start
LH: loop header
LB: loop body
LE: loop exit
PB: predicated region body
PF: predicated region fallthrough
CT: control target
= control target key end

     0   :  { %8 = vsyncpa [#allocation4], 0  ;;  %s1961_s0 = inlined_call_operand.hbm [shape: bf16[128,1152], index: 0, kind: input, shape index: {}]   ;;  %s1962_s1 = inlined_call_operand.hbm [shape: bf16[1152,128], index: 1, kind: input, shape index: {}]   ;;  %s1963_s2 = inlined_call_operand.vmem [shape: f32[1,128], index: 2, kind: input, shape index: {}]   ;;  %s1964_s3 = inlined_call_operand.hbm [shape: bf16[128,128], index: 3, kind: output, shape index: {}]  }
   0x1   :  { %10 = vsyncpa [#allocation4 + $0x1], 0 }
   0x2   :  { %11 = vsyncpa [#allocation7], 0 }
   0x3   :  { %13 = vsyncpa [#allocation7 + $0x1], 0 }
   0x4   :  { %14 = vsyncpa [#allocation5], 0  ;;  %s1708_s12 = smov 0   ;;  %s1710_s13 = smov 0  }
   0x5   :  { %s1712_s14 = smov 0   ;;  %s1714_s15 = smov 0  }
   0x6   :  { %s1716_s16 = smov 0   ;;  %s1718_s17 = smov 0  }
   0x7 LB: > { %s1142_s18 = sadd.s32 4294967295, %s1675_s17   ;;  %s32_s19 = sadd.s32 1, %s1671_s16  ;;  %s1675_s17 = sphi %s1718_s17, %s20_s17   ;;  %s1671_s16 = sphi %s1716_s16, %s1976_s16   ;;  %s1667_s15 = sphi %s1714_s15, %s1975_s15   ;;  %s1663_s14 = sphi %s1712_s14, %s1974_s14   ;;  %s1659_s13 = sphi %s1710_s13, %s1973_s13   ;;  %s1655_s12 = sphi %s1708_s12, %s1972_s12  }
   0x8   : > { %p33_p0 = scmp.ge.s32.totalorder %s32_s19, 3  ;;  %s48_s20 = sadd.s32 1, %s1663_s14 }
   0x9   : > { %p55_p1 = scmp.ne.s32.totalorder %s1663_s14, %s1659_s13  ;;  %p56_p2 = scmp.eq.s32.totalorder %s1675_s17, 0 }
   0xa   : > { %s1978_s19 = smov (%p33_p0, %s32_s19), 0  ;;  %p61_p4 = scmp.ne.s32.totalorder %s1659_s13, %s1655_s12 }
   0xb   : > { %p57_p3 = por %p56_p2, %p55_p1  ;;  %s44_s21 = ssub.s32 %s1671_s16, %s1978_s19 }
   0xc   : > { %p62_p5 = scmp.eq.s32.totalorder %s1142_s18, 0  ;;  %p46_p6 = scmp.eq.s32.totalorder %s44_s21, 0 }
   0xd   : > { %p1415_p8 = scmp.lt.s32.totalorder %s1675_s17, 3  ;;  %s1758_s24 = sand.u32 1, %s1663_s14  }
   0xe   : > { %p1749_p7 = por %p62_p5, %p61_p4  ;;  %s1220_s25 = smul.u32 192, %s1671_s16 }
   0xf   : > { %s1755_s23 = scalar_select %p46_p6, %s1663_s14, %s48_s20  }
  0x10   : > { %s1966_s22 = scalar_select %p1749_p7, 1, 0 }
  0x11   : > { %s1397_s26 = smul.u32 192, %s1758_s24  ;;  %s1765_s29 = scalar_lea.hbm %s1961_s0, %s1220_s25 }
  0x12   : > { %p1767_p9 = pnand %p1415_p8, %p57_p3  ;;  %s174_s6 = scalar_lea.sflag [#allocation4], %s1758_s24 }
  0x13   : > { %s177_s4 = scalar_lea.vmem [#allocation3], %s1397_s26  ;;  %s1531_s7 = scalar_lea.hbm %s1765_s29, 3072 }
  0x14   : > { %s187_s5 = sshll.u32 %s177_s4, 4  ;;  %p1532_p11 = scmp.ne.s32.totalorder %s1765_s29, %s1531_s7  ;;  %s1773_s5 = int_to_ptr.vmem [resolvable:$true] %s187_s5 }
  0x15   : > { %p1533_p12 = pneg %p1767_p9  ;;  %s1536_s10 = scalar_lea.hbm %s1961_s0, 9216 }
  0x16   : > { %p1537_p1 = scmp.lt.u32.totalorder %s1765_s29, %s1961_s0  ;;  %p1538_p2 = scmp.lt.u32.totalorder %s1536_s10, %s1531_s7 }
  0x17   : > { %p1534_p13 = pnand %p1533_p12, %p1532_p11  ;;  %p1540_p4 = scmp.lt.u32.totalorder %s1531_s7, %s1765_s29 }
  0x18   : > { %p1539_p3 = por %p1538_p2, %p1537_p1 }
  0x19   : > { %p1535_p0 = pneg %p1534_p13 }
  0x1a   : > { %p1541_p5 = por %p1540_p4, %p1539_p3 }
  0x1c   : > { %p1542_p6 = pnand %p1541_p5, %p1535_p0 }
  0x1e   : > { %1545 = shalt.err (!%p1542_p6)
}
  0x1f   : > { %s1546_s20 = scalar_lea.vmem %s1773_s5, 3072  ;;  %s1677_s21 = smov [#allocation3]  }
  0x20   : > { %p1547_p8 = scmp.ne.s32.totalorder %s1773_s5, %s1546_s20  ;;  %s1551_s25 = sshll.u32 %s1677_s21, 4  ;;  %s1552_s25 = int_to_ptr.vmem [resolvable:$false] %s1551_s25 }
  0x21   : > { %s1553_s27 = scalar_lea.vmem %s1552_s25, 6144  ;;  %p1554_p10 = scmp.lt.s32.totalorder %s1773_s5, %s1552_s25 }
  0x22   : > { %p1549_p11 = pnand %p1547_p8, %p1533_p12  ;;  %p1555_p1 = scmp.lt.s32.totalorder %s1553_s27, %s1546_s20 }
  0x24   : > { %p1550_p13 = pneg %p1549_p11  ;;  %p1556_p2 = por %p1555_p1, %p1554_p10 }
  0x26   : > { %p1557_p3 = pnand %p1556_p2, %p1550_p13 }
  0x28   : > { %1560 = shalt.err (!%p1557_p3)
}
  0x29   : > { %s1678_s28 = smov 576   ;;  %s1679_s4 = smov 192  }
  0x2a   : > { %s1680_s7 = smov 12   ;;  %p217_p0 = scmp.lt.s32.totalorder %s1675_s17, 4 }
  0x2b   : > { %1411 = dma.hbm_to_vmem [thread:$0]  (!%p1767_p9), %s1765_s29, 3072, %s1773_s5, %s174_s6, %s1678_s28, %s1679_s4, %s1680_s7  }
  0x2c   : > { %s1221_s8 = smul.u32 3072, %s1671_s16  ;;  %p1968_p10 = scmp.ge.s32.totalorder %s1675_s17, 1 }
  0x2d   : > { %s201_s10 = scalar_lea.vmem [#allocation6], %s1397_s26  ;;  %s198_s29 = scalar_lea.sflag [#allocation7], %s1758_s24 }
  0x2e   : > { %p1808_p4 = pnand %p1968_p10, %p217_p0  ;;  %s209_s11 = sshll.u32 %s201_s10, 4  ;;  %s1819_s11 = int_to_ptr.vmem [resolvable:$true] %s209_s11 }
  0x2f   : > { %s1817_s21 = scalar_lea.hbm %s1962_s1, %s1221_s8  ;;  %s1566_s25 = scalar_lea.hbm %s1962_s1, 9216 }
  0x30   : > { %s1561_s5 = scalar_lea.hbm %s1817_s21, 3072  ;;  %p1567_p11 = scmp.lt.u32.totalorder %s1817_s21, %s1962_s1 }
  0x31   : > { %p1562_p5 = scmp.ne.s32.totalorder %s1817_s21, %s1561_s5  ;;  %p1568_p13 = scmp.lt.u32.totalorder %s1566_s25, %s1561_s5 }
  0x32   : > { %p1570_p2 = scmp.lt.u32.totalorder %s1561_s5, %s1817_s21 }
  0x33   : > { %p1564_p6 = pnand %p1562_p5, %p1533_p12  ;;  %p1569_p1 = por %p1568_p13, %p1567_p11 }
  0x35   : > { %p1565_p8 = pneg %p1564_p6  ;;  %p1571_p3 = por %p1570_p2, %p1569_p1 }
  0x37   : > { %p1572_p0 = pnand %p1571_p3, %p1565_p8 }
  0x39   : > { %1575 = shalt.err (!%p1572_p0)
}
  0x3a   : > { %s1576_s4 = scalar_lea.vmem %s1819_s11, 3072  ;;  %s1681_s7 = smov [#allocation6]  }
  0x3b   : > { %p1577_p10 = scmp.ne.s32.totalorder %s1819_s11, %s1576_s4  ;;  %s1581_s8 = sshll.u32 %s1681_s7, 4  ;;  %s1582_s8 = int_to_ptr.vmem [resolvable:$false] %s1581_s8 }
  0x3c   : > { %s1583_s10 = scalar_lea.vmem %s1582_s8, 6144  ;;  %p1584_p7 = scmp.lt.s32.totalorder %s1819_s11, %s1582_s8 }
  0x3d   : > { %p1579_p5 = pnand %p1577_p10, %p1533_p12  ;;  %p1585_p11 = scmp.lt.s32.totalorder %s1583_s10, %s1576_s4 }
  0x3f   : > { %p1580_p6 = pneg %p1579_p5  ;;  %p1586_p13 = por %p1585_p11, %p1584_p7 }
  0x41   : > { %p1587_p1 = pnand %p1586_p13, %p1580_p6 }
  0x43   : > { %1590 = shalt.err (!%p1587_p1)
}
  0x44   : > { %s1682_s12 = smov 64   ;;  %s1683_s20 = smov 4  }
  0x45   : > { %1414 = dma.hbm_to_vmem [thread:$0]  (!%p1767_p9), %s1817_s21, 3072, %s1819_s11, %s198_s29, %s1682_s12, %s1682_s12, %s1683_s20  }
  0x46   : > { %221 = sbr.rel (%p1808_p4) target bundleno = 441 (0x1b9), region = 32  ;;  %s223_s5 = sand.u32 (!%p1808_p4), 1, %s1659_s13  }
  0x47   : > { %s1399_s26 = smul.u32 (!%p1808_p4), 192, %s223_s5  ;;  %s224_s6 = scalar_lea.sflag (!%p1808_p4), [#allocation4], %s223_s5 }
  0x48   : > { %p1970_p7 = scmp.ne.s32.totalorder (!%p1808_p4), %s1966_s22, 0 }
  0x49   : > { %s1850_s25 = scalar_lea.vmem (!%p1808_p4), [#allocation3], %s1399_s26 }
  0x4d   : > { %1642 = dma.done.wait (%p1970_p7), %s224_s6, 3072  }
  0x4e   : > { %1644 = vsyncadd (%p1970_p7), %s224_s6, 4294964224  ;;  %s233_s27 = scalar_lea.sflag [#allocation7], %s223_s5  ;;  %s1856_s30 = scalar_lea.vmem [#allocation6], %s1399_s26 }
  0x4f   : > { %1646 = dma.done.wait (%p1970_p7), %s233_s27, 3072  }
  0x50   : > { %1648 = vsyncadd (%p1970_p7), %s233_s27, 4294964224  ;;  %p1149_p9 = scmp.ne.s32.totalorder %s1667_s15, 0 }
  0x51   : > { %v1684_v0 = vmov (!%p1149_p9), 0.0  }
  0x52   : > { %273 = sbr.rel (%p1149_p9) target bundleno = 90 (0x5a), region = 44  ;;  %274 = vst [vmem:[#allocation2] sm:$0xff] (!%p1149_p9), %v1684_v0  ;;  %275 = vst [vmem:[#allocation2 + $0x8] sm:$0xff] (!%p1149_p9), %v1684_v0 }
  0x53   : > { %276 = vst [vmem:[#allocation2 + $0x10] sm:$0xff] (!%p1149_p9), %v1684_v0  ;;  %277 = vst [vmem:[#allocation2 + $0x18] sm:$0xff] (!%p1149_p9), %v1684_v0 }
  0x54   : > { %278 = vst [vmem:[#allocation2 + $0x20] sm:$0xff] (!%p1149_p9), %v1684_v0  ;;  %279 = vst [vmem:[#allocation2 + $0x28] sm:$0xff] (!%p1149_p9), %v1684_v0 }
  0x55   : > { %280 = vst [vmem:[#allocation2 + $0x30] sm:$0xff] (!%p1149_p9), %v1684_v0  ;;  %281 = vst [vmem:[#allocation2 + $0x38] sm:$0xff] (!%p1149_p9), %v1684_v0 }
  0x56   : > { %282 = vst [vmem:[#allocation2 + $0x40] sm:$0xff] (!%p1149_p9), %v1684_v0  ;;  %283 = vst [vmem:[#allocation2 + $0x48] sm:$0xff] (!%p1149_p9), %v1684_v0 }
  0x57   : > { %284 = vst [vmem:[#allocation2 + $0x50] sm:$0xff] (!%p1149_p9), %v1684_v0  ;;  %285 = vst [vmem:[#allocation2 + $0x58] sm:$0xff] (!%p1149_p9), %v1684_v0 }
  0x58   : > { %286 = vst [vmem:[#allocation2 + $0x60] sm:$0xff] (!%p1149_p9), %v1684_v0  ;;  %287 = vst [vmem:[#allocation2 + $0x68] sm:$0xff] (!%p1149_p9), %v1684_v0 }
  0x59   : > { %288 = vst [vmem:[#allocation2 + $0x70] sm:$0xff] %v1684_v0  ;;  %289 = vst [vmem:[#allocation2 + $0x78] sm:$0xff] %v1684_v0 }
  0x5a PF: > { %v1475_v1 = vld [vmem:[%s1856_s30 + $0x40] sm:$0xff]   ;;  %v1478_v4 = vld [vmem:[%s1856_s30 + $0x48] sm:$0xff]   ;;  %v1481_v7 = vld [vmem:[%s1856_s30 + $0x50] sm:$0xff]   ;;  %p1198_p12 = scmp.ne.s32.totalorder %s1667_s15, 2 }
  0x5b   : > { %v1476_v2 = vld [vmem:[%s1856_s30] sm:$0xff]   ;;  %1285 = vmatprep.subr.bf16.mxu0 %v1475_v1  ;;  %v1479_v5 = vld [vmem:[%s1856_s30 + $0x8] sm:$0xff]   ;;  %v1482_v8 = vld [vmem:[%s1856_s30 + $0x10] sm:$0xff]  }
  0x5c   : > { %v1477_v3 = vld [vmem:[%s1856_s30 + $0x80] sm:$0xff]   ;;  %1286 = vmatpush3.bf16.msra.mxu0 %v1476_v2  ;;  %v1480_v6 = vld [vmem:[%s1856_s30 + $0x88] sm:$0xff]   ;;  %v1483_v9 = vld [vmem:[%s1856_s30 + $0x90] sm:$0xff]  }
  0x5d   : > { %1365 = vmatprep.subr.bf16.mxu1 %v1477_v3  ;;  %1287 = vmatprep.subr.bf16.mxu0 %v1478_v4  ;;  %v1484_v10 = vld [vmem:[%s1856_s30 + $0x58] sm:$0xff]   ;;  %v1487_v13 = vld [vmem:[%s1856_s30 + $0x60] sm:$0xff]   ;;  %v1490_v16 = vld [vmem:[%s1856_s30 + $0x68] sm:$0xff]  }
  0x5e   : > { %1366 = vmatpush3.bf16.msra.mxu1 %v1477_v3  ;;  %v1485_v11 = vld [vmem:[%s1856_s30 + $0x18] sm:$0xff]   ;;  %v1489_v14 = vld [vmem:[%s1856_s30 + $0xa0] sm:$0xff]   ;;  %v1492_v17 = vld [vmem:[%s1856_s30 + $0xa8] sm:$0xff]  }
  0x5f   : > { %1367 = vmatprep.subr.bf16.mxu1 %v1480_v6  ;;  %v1486_v12 = vld [vmem:[%s1856_s30 + $0x98] sm:$0xff]   ;;  %v1488_v15 = vld [vmem:[%s1856_s30 + $0x20] sm:$0xff]   ;;  %v1491_v18 = vld [vmem:[%s1856_s30 + $0x28] sm:$0xff]  }
  0x60   : > { %1288 = vmatpush3.bf16.msra.mxu0 %v1479_v5  ;;  %v1493_v19 = vld [vmem:[%s1856_s30 + $0x70] sm:$0xff]   ;;  %v1496_v22 = vld [vmem:[%s1856_s30 + $0x78] sm:$0xff]   ;;  %v1499_v27 = vld [vmem:[%s1850_s25] ss:$12 sps:$4 sm:$0xff]  }
  0x61   : > { %1289 = vmatprep.subr.bf16.mxu0 %v1481_v7  ;;  %v1494_v20 = vld [vmem:[%s1856_s30 + $0x30] sm:$0xff]   ;;  %v1498_v23 = vld [vmem:[%s1856_s30 + $0xb8] sm:$0xff]   ;;  %v1503_v29 = vld [vmem:[%s1850_s25 + $0x20] ss:$12 sps:$4 sm:$0xff]  }
  0x62   : > { %1368 = vmatpush3.bf16.msra.mxu1 %v1480_v6  ;;  %v1495_v21 = vld [vmem:[%s1856_s30 + $0xb0] sm:$0xff]   ;;  %v1497_v26 = vld [vmem:[%s1856_s30 + $0x38] sm:$0xff]   ;;  %v1519_v37 = vld [vmem:[%s1850_s25 + $0x80] ss:$12 sps:$4 sm:$0xff]  }
  0x63   : > { %1369 = vmatprep.subr.bf16.mxu1 %v1483_v9  ;;  %v1501_v24 = vld [vmem:[%s1850_s25 + $0x4] ss:$12 sps:$4 sm:$0xff]   ;;  %v1502_v25 = vld [vmem:[%s1850_s25 + $0x8] ss:$12 sps:$4 sm:$0xff]   ;;  %v1512_v36 = vld [vmem:[%s1850_s25 + $0x4c] ss:$12 sps:$4 sm:$0xff]  }
  0x64   : > { %1290 = vmatpush3.bf16.msra.mxu0 %v1482_v8  ;;  %690 = vmatprep.mubr.bf16.mxu0 %v1501_v24  ;;  %v1504_v28 = vld [vmem:[%s1850_s25 + $0x1c] ss:$12 sps:$4 sm:$0xff]   ;;  %v1510_v30 = vld [vmem:[%s1850_s25 + $0x38] ss:$12 sps:$4 sm:$0xff]   ;;  %v1507_v32 = vld [vmem:[%s1850_s25 + $0x34] ss:$12 sps:$4 sm:$0xff]  }
  0x65   : > { %1291 = vmatprep.subr.bf16.mxu0 %v1484_v10  ;;  %1381 = vmatprep.mubr.bf16.mxu1 %v1502_v25  ;;  %v1506_v31 = vld [vmem:[%s1850_s25 + $0x18] ss:$12 sps:$4 sm:$0xff]   ;;  %v1511_v33 = vld [vmem:[%s1850_s25 + $0x50] ss:$12 sps:$4 sm:$0xff]   ;;  %v1518_v34 = vld [vmem:[%s1850_s25 + $0x68] ss:$12 sps:$4 sm:$0xff]  }
  0x66   : > { %1370 = vmatpush3.bf16.msra.mxu1 %v1483_v9  ;;  %v1509_v35 = vld [vmem:[%s1850_s25 + $0x30] ss:$12 sps:$4 sm:$0xff]   ;;  %v1526_v38 = vld [vmem:[%s1850_s25 + $0x98] ss:$12 sps:$4 sm:$0xff]   ;;  %v1514_v39 = vld [vmem:[%s1850_s25 + $0x48] ss:$12 sps:$4 sm:$0xff]  }
  0x67   : > { %1371 = vmatprep.subr.bf16.mxu1 %v1486_v12  ;;  %v1515_v40 = vld [vmem:[%s1850_s25 + $0x64] ss:$12 sps:$4 sm:$0xff]   ;;  %v1517_v42 = vld [vmem:[%s1850_s25 + $0x60] ss:$12 sps:$4 sm:$0xff]   ;;  %v1520_v43 = vld [vmem:[%s1850_s25 + $0x7c] ss:$12 sps:$4 sm:$0xff]  }
  0x68   : > { %1292 = vmatpush3.bf16.msra.mxu0 %v1485_v11  ;;  %v1527_v41 = vld [vmem:[%s1850_s25 + $0xb0] ss:$12 sps:$4 sm:$0xff]   ;;  %v1522_v44 = vld [vmem:[%s1850_s25 + $0x78] ss:$12 sps:$4 sm:$0xff]   ;;  %v1523_v45 = vld [vmem:[%s1850_s25 + $0x94] ss:$12 sps:$4 sm:$0xff]  }
  0x69   : > { %1293 = vmatprep.subr.bf16.mxu0 %v1487_v13  ;;  %v1525_v46 = vld [vmem:[%s1850_s25 + $0x90] ss:$12 sps:$4 sm:$0xff]   ;;  %v1528_v47 = vld [vmem:[%s1850_s25 + $0xac] ss:$12 sps:$4 sm:$0xff]   ;;  %v1530_v48 = vld [vmem:[%s1850_s25 + $0xa8] ss:$12 sps:$4 sm:$0xff]  }
  0x6a   : > { %1372 = vmatpush3.bf16.msra.mxu1 %v1486_v12  ;;  %v290_v55 = vld [vmem:[#allocation2] sm:$0xff]  ;;  %v291_v60 = vld [vmem:[#allocation2 + $0x8] sm:$0xff]  ;;  %v292_v6 = vld [vmem:[#allocation2 + $0x10] sm:$0xff] }
  0x6b   : > { %1373 = vmatprep.subr.bf16.mxu1 %v1489_v14  ;;  %v293_v12 = vld [vmem:[#allocation2 + $0x18] sm:$0xff] }
  0x6c   : > { %1294 = vmatpush3.bf16.msra.mxu0 %v1488_v15 }
  0x6d   : > { %1295 = vmatprep.subr.bf16.mxu0 %v1490_v16 }
  0x6e   : > { %1374 = vmatpush3.bf16.msra.mxu1 %v1489_v14 }
  0x6f   : > { %1375 = vmatprep.subr.bf16.mxu1 %v1492_v17 }
  0x70   : > { %1296 = vmatpush3.bf16.msra.mxu0 %v1491_v18 }
  0x71   : > { %1297 = vmatprep.subr.bf16.mxu0 %v1493_v19 }
  0x72   : > { %1376 = vmatpush3.bf16.msra.mxu1 %v1492_v17 }
  0x73   : > { %1377 = vmatprep.subr.bf16.mxu1 %v1495_v21 }
  0x74   : > { %1298 = vmatpush3.bf16.msra.mxu0 %v1494_v20 }
  0x75   : > { %1299 = vmatprep.subr.bf16.mxu0 %v1496_v22 }
  0x76   : > { %1378 = vmatpush3.bf16.msra.mxu1 %v1495_v21 }
  0x77   : > { %1379 = vmatprep.subr.bf16.mxu1 %v1498_v23 }
  0x78   : > { %1300 = vmatpush3.bf16.msra.mxu0 %v1497_v26 }
  0x7a   : > { %1380 = vmatpush3.bf16.msra.mxu1 %v1498_v23  ;;  %v294_v23 = vld [vmem:[#allocation2 + $0x20] sm:$0xff] }
  0x7b   : > { %691 = vmatmul.mubr.bf16.vlgmr.msra.gmra.mrb[0].mxu0 %v1499_v27 }
  0x7c   : > { %698 = vmatprep.mubr.bf16.mxu0 %v1504_v28  ;;  %v295_v28 = vld [vmem:[#allocation2 + $0x28] sm:$0xff] }
  0x7d   : > { %1382 = vmatmul.mubr.bf16.vlgmr.msra.gmra.mrb[0].mxu1 %v1503_v29 }
  0x7e   : > { %1385 = vmatprep.mubr.bf16.mxu1 %v1510_v30 }
  0x83   : > { %699 = vmatmul.mubr.bf16.gmra.mrb[4].mxu0 %v1506_v31 }
  0x84   : > { %706 = vmatprep.mubr.bf16.mxu0 %v1507_v32 }
  0x85   : > { %1386 = vmatmul.mubr.bf16.gmra.mrb[4].mxu1 %v1511_v33 }
  0x86   : > { %1389 = vmatprep.mubr.bf16.mxu1 %v1518_v34 }
  0x8b   : > { %707 = vmatmul.mubr.bf16.gmra.mrb[8].mxu0 %v1509_v35 }
  0x8c   : > { %714 = vmatprep.mubr.bf16.mxu0 %v1512_v36 }
  0x8d   : > { %1390 = vmatmul.mubr.bf16.gmra.mrb[8].mxu1 %v1519_v37 }
  0x8e   : > { %1393 = vmatprep.mubr.bf16.mxu1 %v1526_v38  ;;  %v296_v38 = vld [vmem:[#allocation2 + $0x30] sm:$0xff] }
  0x93   : > { %715 = vmatmul.mubr.bf16.gmra.mrb[12].mxu0 %v1514_v39 }
  0x94   : > { %722 = vmatprep.mubr.bf16.mxu0 %v1515_v40 }
  0x95   : > { %1394 = vmatmul.mubr.bf16.gmra.mrb[12].mxu1 %v1527_v41 }
  0x9b   : > { %723 = vmatmul.mubr.bf16.gmra.mrb[16].mxu0 %v1517_v42 }
  0x9c   : > { %730 = vmatprep.mubr.bf16.mxu0 %v1520_v43 }
  0xa3   : > { %731 = vmatmul.mubr.bf16.gmra.mrb[20].mxu0 %v1522_v44  ;;  %v297_v44 = vld [vmem:[#allocation2 + $0x38] sm:$0xff] }
  0xa4   : > { %738 = vmatprep.mubr.bf16.mxu0 %v1523_v45 }
  0xab   : > { %739 = vmatmul.mubr.bf16.gmra.mrb[24].mxu0 %v1525_v46 }
  0xac   : > { %746 = vmatprep.mubr.bf16.mxu0 %v1528_v47 }
  0xb3   : > { %747 = vmatmul.mubr.bf16.gmra.mrb[28].mxu0 %v1530_v48 }
 0x14e   : > { %v1301_v49 = vpop.f32.mrb[0].mxu0 }
 0x14f   : > { %v1302_v50 = vpop.f32.mrb[1].mxu0 }
 0x150   : > { %v1303_v51 = vadd.f32 %v1302_v50, %v1301_v49  ;;  %v1304_v52 = vpop.f32.mrb[2].mxu0  ;;  %v1383_v53 = vpop.f32.mrb[0].mxu1 }
 0x151   : > { %v1305_v54 = vpop.f32.mrb[3].mxu0  ;;  %v789_v56 = vpop.f32.mrb[1].mxu1 }
 0x152   : > { %v1306_v57 = vadd.f32 %v1305_v54, %v1304_v52  ;;  %v790_v58 = vadd.f32 %v1303_v51, %v789_v56  ;;  %v1384_v59 = vpop.f32.mrb[2].mxu1  ;;  %v298_v54 = vld [vmem:[#allocation2 + $0x40] sm:$0xff] }
 0x153   : > { %v792_v61 = vpop.f32.mrb[3].mxu1 }
 0x154   : > { %v852_v62 = vadd.f32 %v790_v58, %v290_v55  ;;  %v793_v63 = vadd.f32 %v1306_v57, %v792_v61  ;;  %v299_v57 = vld [vmem:[#allocation2 + $0x48] sm:$0xff] }
 0x156   : > { %868 = vst [vmem:[#allocation2] sm:$0xff] %v852_v62  ;;  %v853_v0 = vadd.f32 %v793_v63, %v291_v60  ;;  %v1307_v1 = vpop.f32.mrb[4].mxu0 }
 0x157   : > { %v1308_v2 = vpop.f32.mrb[5].mxu0 }
 0x158   : > { %869 = vst [vmem:[#allocation2 + $0x8] sm:$0xff] %v853_v0  ;;  %v1309_v3 = vadd.f32 %v1308_v2, %v1307_v1  ;;  %v1310_v4 = vpop.f32.mrb[6].mxu0  ;;  %v1387_v5 = vpop.f32.mrb[4].mxu1  ;;  %v300_v1 = vld [vmem:[#allocation2 + $0x50] sm:$0xff] }
 0x159   : > { %v1311_v7 = vpop.f32.mrb[7].mxu0  ;;  %v805_v8 = vpop.f32.mrb[5].mxu1 }
 0x15a   : > { %v798_v9 = vadd.f32 %v1383_v53, %v1309_v3  ;;  %v1312_v10 = vadd.f32 %v1311_v7, %v1310_v4  ;;  %v1388_v11 = vpop.f32.mrb[6].mxu1 }
 0x15b   : > { %v808_v13 = vpop.f32.mrb[7].mxu1 }
 0x15c   : > { %v854_v14 = vadd.f32 %v798_v9, %v292_v6  ;;  %v801_v15 = vadd.f32 %v1384_v59, %v1312_v10 }
 0x15e   : > { %870 = vst [vmem:[#allocation2 + $0x10] sm:$0xff] %v854_v14  ;;  %v855_v16 = vadd.f32 %v801_v15, %v293_v12  ;;  %v1313_v17 = vpop.f32.mrb[8].mxu0  ;;  %v302_v14 = vld [vmem:[#allocation2 + $0x60] sm:$0xff] }
 0x15f   : > { %v1314_v18 = vpop.f32.mrb[9].mxu0 }
 0x160   : > { %871 = vst [vmem:[#allocation2 + $0x18] sm:$0xff] %v855_v16  ;;  %v1315_v19 = vadd.f32 %v1314_v18, %v1313_v17  ;;  %v1316_v20 = vpop.f32.mrb[10].mxu0  ;;  %v1391_v21 = vpop.f32.mrb[8].mxu1  ;;  %v303_v17 = vld [vmem:[#allocation2 + $0x68] sm:$0xff] }
 0x161   : > { %v1317_v22 = vpop.f32.mrb[11].mxu0  ;;  %v821_v24 = vpop.f32.mrb[9].mxu1 }
 0x162   : > { %v1318_v25 = vadd.f32 %v1317_v22, %v1316_v20  ;;  %v806_v26 = vadd.f32 %v1315_v19, %v805_v8  ;;  %v1392_v27 = vpop.f32.mrb[10].mxu1 }
 0x163   : > { %v824_v29 = vpop.f32.mrb[11].mxu1 }
 0x164   : > { %v856_v30 = vadd.f32 %v806_v26, %v294_v23  ;;  %v809_v31 = vadd.f32 %v1318_v25, %v808_v13  ;;  %v304_v25 = vld [vmem:[#allocation2 + $0x70] sm:$0xff] }
 0x166   : > { %872 = vst [vmem:[#allocation2 + $0x20] sm:$0xff] %v856_v30  ;;  %v857_v32 = vadd.f32 %v809_v31, %v295_v28  ;;  %v1319_v33 = vpop.f32.mrb[12].mxu0 }
 0x167   : > { %v1320_v34 = vpop.f32.mrb[13].mxu0 }
 0x168   : > { %873 = vst [vmem:[#allocation2 + $0x28] sm:$0xff] %v857_v32  ;;  %v1321_v35 = vadd.f32 %v1320_v34, %v1319_v33  ;;  %v1322_v36 = vpop.f32.mrb[14].mxu0  ;;  %v1395_v37 = vpop.f32.mrb[12].mxu1  ;;  %v888_v33 = vld [vmem:[#allocation2] sm:$0xff] (!%p1198_p12)  ;;  %v889_v34 = vld [vmem:[#allocation2 + $0x8] sm:$0xff] (!%p1198_p12) }
 0x169   : > { %v1323_v39 = vpop.f32.mrb[15].mxu0  ;;  %v837_v40 = vpop.f32.mrb[13].mxu1 }
 0x16a   : > { %v814_v41 = vadd.f32 %v1387_v5, %v1321_v35  ;;  %v1324_v42 = vadd.f32 %v1323_v39, %v1322_v36  ;;  %v1396_v43 = vpop.f32.mrb[14].mxu1  ;;  %v301_v5 = vld [vmem:[#allocation2 + $0x58] sm:$0xff]  ;;  %v1199_v35 = vld [vmem:[%s1963_s2] ss:$0 sm:$0xff] (!%p1198_p12)  ;;  %v890_v39 = vld [vmem:[#allocation2 + $0x10] sm:$0xff] (!%p1198_p12) }
 0x16b   : > { %v840_v45 = vpop.f32.mrb[15].mxu1  ;;  %v911_v36 = vadd.f32 (!%p1198_p12), %v1199_v35, %v888_v33 }
 0x16c   : > { %v858_v46 = vadd.f32 %v814_v41, %v296_v38  ;;  %v817_v47 = vadd.f32 %v1388_v11, %v1324_v42  ;;  %v912_v38 = vadd.f32 (!%p1198_p12), %v1199_v35, %v889_v34  ;;  %v913_v41 = vadd.f32 (!%p1198_p12), %v1199_v35, %v890_v39 }
 0x16e   : > { %874 = vst [vmem:[#allocation2 + $0x30] sm:$0xff] %v858_v46  ;;  %v859_v48 = vadd.f32 %v817_v47, %v297_v44  ;;  %v1325_v49 = vpop.f32.mrb[16].mxu0  ;;  %v927_v47 = vmax.f32 (!%p1198_p12), %v911_v36, 0.0 }
 0x16f   : > { %v1326_v50 = vpop.f32.mrb[17].mxu0 }
 0x170   : > { %875 = vst [vmem:[#allocation2 + $0x38] sm:$0xff] %v859_v48  ;;  %v1327_v51 = vadd.f32 %v1326_v50, %v1325_v49  ;;  %v1328_v52 = vpop.f32.mrb[18].mxu0  ;;  %v928_v48 = vmax.f32 (!%p1198_p12), %v912_v38, 0.0 }
 0x171   : > { %v1329_v53 = vpop.f32.mrb[19].mxu0 }
 0x172   : > { %v1330_v55 = vadd.f32 %v1329_v53, %v1328_v52  ;;  %v822_v56 = vadd.f32 %v1327_v51, %v821_v24 }
 0x174   : > { %v860_v58 = vadd.f32 %v822_v56, %v298_v54  ;;  %v825_v59 = vadd.f32 %v1330_v55, %v824_v29  ;;  %v305_v29 = vld [vmem:[#allocation2 + $0x78] sm:$0xff]  ;;  %v929_v54 = vmax.f32 (!%p1198_p12), %v913_v41, 0.0 }
 0x176   : > { %876 = vst [vmem:[#allocation2 + $0x40] sm:$0xff] %v860_v58  ;;  %v861_v60 = vadd.f32 %v825_v59, %v299_v57  ;;  %v1331_v61 = vpop.f32.mrb[20].mxu0 }
 0x177   : > { %v1332_v62 = vpop.f32.mrb[21].mxu0  ;;  %v895_v46 = vld [vmem:[#allocation2 + $0x38] sm:$0xff] (!%p1198_p12) }
 0x178   : > { %877 = vst [vmem:[#allocation2 + $0x48] sm:$0xff] %v861_v60  ;;  %v1333_v63 = vadd.f32 %v1332_v62, %v1331_v61  ;;  %v1334_v0 = vpop.f32.mrb[22].mxu0  ;;  %v918_v57 = vadd.f32 (!%p1198_p12), %v1199_v35, %v895_v46  ;;  %v1241_v60 = vpack.c.bf16 (!%p1198_p12), %v928_v48, %v927_v47 }
 0x179   : > { %v1335_v2 = vpop.f32.mrb[23].mxu0 }
 0x17a   : > { %v830_v3 = vadd.f32 %v1391_v21, %v1333_v63  ;;  %v1336_v4 = vadd.f32 %v1335_v2, %v1334_v0  ;;  %v934_v2 = vmax.f32 (!%p1198_p12), %v918_v57, 0.0  ;;  %1242 = vst [vmem:[#allocation8] sm:$0xff] (!%p1198_p12), %v1241_v60  }
 0x17c   : > { %v862_v6 = vadd.f32 %v830_v3, %v300_v1  ;;  %v833_v7 = vadd.f32 %v1392_v27, %v1336_v4 }
 0x17d   : > { %v896_v51 = vld [vmem:[#allocation2 + $0x40] sm:$0xff] (!%p1198_p12) }
 0x17e   : > { %878 = vst [vmem:[#allocation2 + $0x50] sm:$0xff] %v862_v6  ;;  %v863_v8 = vadd.f32 %v833_v7, %v301_v5  ;;  %v1337_v9 = vpop.f32.mrb[24].mxu0  ;;  %v919_v63 = vadd.f32 (!%p1198_p12), %v1199_v35, %v896_v51 }
 0x17f   : > { %v1338_v10 = vpop.f32.mrb[25].mxu0  ;;  %v897_v52 = vld [vmem:[#allocation2 + $0x48] sm:$0xff] (!%p1198_p12) }
 0x180   : > { %879 = vst [vmem:[#allocation2 + $0x58] sm:$0xff] %v863_v8  ;;  %v1339_v11 = vadd.f32 %v1338_v10, %v1337_v9  ;;  %v1340_v12 = vpop.f32.mrb[26].mxu0  ;;  %v920_v3 = vadd.f32 (!%p1198_p12), %v1199_v35, %v897_v52  ;;  %v935_v8 = vmax.f32 (!%p1198_p12), %v919_v63, 0.0 }
 0x181   : > { %v1341_v13 = vpop.f32.mrb[27].mxu0 }
 0x182   : > { %v1342_v15 = vadd.f32 %v1341_v13, %v1340_v12  ;;  %v838_v16 = vadd.f32 %v1339_v11, %v837_v40  ;;  %v892_v40 = vld [vmem:[#allocation2 + $0x20] sm:$0xff] (!%p1198_p12)  ;;  %v936_v12 = vmax.f32 (!%p1198_p12), %v920_v3, 0.0 }
 0x183   : > { %v915_v44 = vadd.f32 (!%p1198_p12), %v1199_v35, %v892_v40 }
 0x184   : > { %v864_v18 = vadd.f32 %v838_v16, %v302_v14  ;;  %v841_v19 = vadd.f32 %v1342_v15, %v840_v45  ;;  %v894_v45 = vld [vmem:[#allocation2 + $0x30] sm:$0xff] (!%p1198_p12) }
 0x185   : > { %v917_v50 = vadd.f32 (!%p1198_p12), %v1199_v35, %v894_v45  ;;  %v898_v53 = vld [vmem:[#allocation2 + $0x50] sm:$0xff] (!%p1198_p12)  ;;  %v931_v56 = vmax.f32 (!%p1198_p12), %v915_v44, 0.0 }
 0x186   : > { %880 = vst [vmem:[#allocation2 + $0x60] sm:$0xff] %v864_v18  ;;  %v865_v20 = vadd.f32 %v841_v19, %v303_v17  ;;  %v1343_v21 = vpop.f32.mrb[28].mxu0  ;;  %v921_v4 = vadd.f32 (!%p1198_p12), %v1199_v35, %v898_v53  ;;  %v1261_v19 = vpack.c.bf16 (!%p1198_p12), %v936_v12, %v935_v8 }
 0x187   : > { %v1344_v22 = vpop.f32.mrb[29].mxu0  ;;  %v899_v58 = vld [vmem:[#allocation2 + $0x58] sm:$0xff] (!%p1198_p12)  ;;  %v933_v62 = vmax.f32 (!%p1198_p12), %v917_v50, 0.0 }
 0x188   : > { %881 = vst [vmem:[#allocation2 + $0x68] sm:$0xff] %v865_v20  ;;  %v1345_v23 = vadd.f32 %v1344_v22, %v1343_v21  ;;  %v1346_v24 = vpop.f32.mrb[30].mxu0  ;;  %v922_v9 = vadd.f32 (!%p1198_p12), %v1199_v35, %v899_v58  ;;  %v937_v13 = vmax.f32 (!%p1198_p12), %v921_v4, 0.0  ;;  %1281 = vst [vmem:[#allocation8 + $0x20] sm:$0xff] (!%p1198_p12), %v1261_v19  }
 0x189   : > { %v1347_v26 = vpop.f32.mrb[31].mxu0  ;;  %v1256_v11 = vpack.c.bf16 (!%p1198_p12), %v934_v2, %v933_v62 }
 0x18a   : > { %v846_v27 = vadd.f32 %v1395_v37, %v1345_v23  ;;  %v1348_v28 = vadd.f32 %v1347_v26, %v1346_v24  ;;  %887 = sbr.rel (%p1198_p12) target bundleno = 415 (0x19f), region = 48  ;;  %v891_v37 = vld [vmem:[#allocation2 + $0x18] sm:$0xff] (!%p1198_p12)  ;;  %v938_v15 = vmax.f32 (!%p1198_p12), %v922_v9, 0.0 }
 0x18b   : > { %v914_v42 = vadd.f32 (!%p1198_p12), %v1199_v35, %v891_v37  ;;  %1280 = vst [vmem:[#allocation8 + $0x18] sm:$0xff] (!%p1198_p12), %v1256_v11  }
 0x18c   : > { %v866_v30 = vadd.f32 %v846_v27, %v304_v25  ;;  %v849_v31 = vadd.f32 %v1396_v43, %v1348_v28  ;;  %v893_v43 = vld [vmem:[#allocation2 + $0x28] sm:$0xff] (!%p1198_p12)  ;;  %v1266_v21 = vpack.c.bf16 (!%p1198_p12), %v938_v15, %v937_v13 }
 0x18d   : > { %v916_v49 = vadd.f32 (!%p1198_p12), %v1199_v35, %v893_v43  ;;  %v930_v55 = vmax.f32 (!%p1198_p12), %v914_v42, 0.0  ;;  %v900_v59 = vld [vmem:[#allocation2 + $0x60] sm:$0xff] (!%p1198_p12) }
 0x18e   : > { %882 = vst [vmem:[#allocation2 + $0x70] sm:$0xff] %v866_v30  ;;  %v867_v32 = vadd.f32 %v849_v31, %v305_v29  ;;  %v923_v10 = vadd.f32 (!%p1198_p12), %v1199_v35, %v900_v59  ;;  %1282 = vst [vmem:[#allocation8 + $0x28] sm:$0xff] (!%p1198_p12), %v1266_v21  }
 0x18f   : > { %v932_v61 = vmax.f32 (!%p1198_p12), %v916_v49, 0.0  ;;  %v901_v0 = vld [vmem:[#allocation2 + $0x68] sm:$0xff] (!%p1198_p12)  ;;  %v1246_v1 = vpack.c.bf16 (!%p1198_p12), %v930_v55, %v929_v54 }
 0x190   : > { %883 = vst [vmem:[#allocation2 + $0x78] sm:$0xff] %v867_v32  ;;  %v924_v14 = vadd.f32 (!%p1198_p12), %v1199_v35, %v901_v0  ;;  %v939_v16 = vmax.f32 (!%p1198_p12), %v923_v10, 0.0 }
 0x191   : > { %v1251_v7 = vpack.c.bf16 %v932_v61, %v931_v56  ;;  %1278 = vst [vmem:[#allocation8 + $0x8] sm:$0xff] %v1246_v1  }
 0x192   : > { %v940_v20 = vmax.f32 %v924_v14, 0.0 }
 0x193   : > { %1279 = vst [vmem:[#allocation8 + $0x10] sm:$0xff] %v1251_v7  }
 0x194   : > { %v1271_v24 = vpack.c.bf16 %v940_v20, %v939_v16 }
 0x195   : > { %v902_v5 = vld [vmem:[#allocation2 + $0x70] sm:$0xff] }
 0x196   : > { %v925_v17 = vadd.f32 %v1199_v35, %v902_v5  ;;  %1283 = vst [vmem:[#allocation8 + $0x30] sm:$0xff] %v1271_v24  }
 0x197   : > { %v903_v6 = vld [vmem:[#allocation2 + $0x78] sm:$0xff] }
 0x198   : > { %v926_v18 = vadd.f32 %v1199_v35, %v903_v6  ;;  %v941_v22 = vmax.f32 %v925_v17, 0.0 }
 0x19a   : > { %v942_v23 = vmax.f32 %v926_v18, 0.0 }
 0x19c   : > { %v1276_v25 = vpack.c.bf16 %v942_v23, %v941_v22 }
 0x19e   : > { %1284 = vst [vmem:[#allocation8 + $0x38] sm:$0xff] %v1276_v25  }
 0x19f PF: > { %p1917_p4 = scmp.eq.s32.totalorder %s1142_s18, 2  ;;  %s1685_s9 = smov [#allocation8]  }
 0x1a0   : > { %s1033_s11 = sshll.u32 %s1685_s9, 4  ;;  %s1034_s11 = int_to_ptr.vmem [resolvable:$true] %s1033_s11 }
 0x1a1   : > { %s1591_s21 = scalar_lea.vmem %s1034_s11, 1024  ;;  %p1598_p0 = scmp.lt.s32.totalorder %s1034_s11, %s1034_s11 }
 0x1a2   : > { %p1592_p8 = scmp.ne.s32.totalorder %s1034_s11, %s1591_s21  ;;  %p1599_p10 = scmp.lt.s32.totalorder %s1591_s21, %s1591_s21 }
 0x1a4   : > { %p1593_p2 = pnand %p1592_p8, %p1917_p4  ;;  %p1600_p5 = por %p1599_p10, %p1598_p0 }
 0x1a6   : > { %p1594_p3 = pneg %p1593_p2 }
 0x1a8   : > { %p1601_p6 = pnand %p1600_p5, %p1594_p3 }
 0x1aa   : > { %1604 = shalt.err (!%p1601_p6)
}
 0x1ab   : > { %s1605_s18 = scalar_lea.hbm %s1964_s3, 1024 }
 0x1ac   : > { %p1606_p11 = scmp.ne.s32.totalorder %s1964_s3, %s1605_s18  ;;  %p1611_p7 = scmp.lt.u32.totalorder %s1605_s18, %s1964_s3 }
 0x1ae   : > { %p1607_p13 = pnand %p1606_p11, %p1917_p4 }
 0x1b0   : > { %p1608_p1 = pneg %p1607_p13 }
 0x1b2   : > { %p1613_p9 = pnand %p1611_p7, %p1608_p1 }
 0x1b4   : > { %1616 = shalt.err (!%p1613_p9)
}
 0x1b5   : > { %s1686_s12 = smov 64   ;;  %s1687_s20 = smov 4  }
 0x1b6   : > { %1405 = dma.vmem_to_hbm [thread:$0]  (%p1917_p4), %s1034_s11, 1024, %s1964_s3, [#allocation5], %s1686_s12, %s1686_s12, %s1687_s20  }
 0x1b7   : > { %1650 = dma.done.wait (%p1917_p4), [#allocation5], 1024  }
 0x1b8   : > { %1652 = vsyncadd (%p1917_p4), [#allocation5], 4294966272 }
 0x1b9 PF: > { %s20_s17 = sadd.s32 1, %s1675_s17   ;;  %s1972_s12 = smov %s1659_s13 }
 0x1ba   : > { %p17_p12 = scmp.ge.s32.totalorder %s20_s17, 5   ;;  %s1973_s13 = smov %s1663_s14 }
 0x1bb   : > { %s1974_s14 = smov %s1755_s23  ;;  %s1975_s15 = smov %s1671_s16 }
 0x1bc   : > { %s1976_s16 = smov %s1978_s19  ;;  %19 = sbr.rel (!%p17_p12) target bundleno = 7 (0x7), region = 94 }
 0x1c3   :  { %1049 = vsyncpa [#allocation4], 1 }
 0x1c4   :  { %1051 = vsyncpa [#allocation4 + $0x1], 1 }
 0x1c5   :  { %1052 = vsyncpa [#allocation7], 1 }
 0x1c6   :  { %1054 = vsyncpa [#allocation7 + $0x1], 1 }
 0x1c7   :  { %1055 = vsyncpa [#allocation5], 1 }
 0x1c8   :  { %1057 = vsyncpa [#allocation5 + $0x1], 1 }

</bundles_post_ra>
